<compile_context>
chip_gen: v7x
topology: tpu7x:2x2x1
jax: 0.10.0
libtpu: 0.0.40
codegen_flags: <defaults>
</compile_context>

<pallas_src>
import jax
import jax.numpy as jnp
from jax.experimental import pallas as pl
from jax.experimental.pallas import tpu as pltpu


def kmodel_kernel(x_ref, w_ref, bf_ref, wc_ref, bc_ref, out_ref):
    # feature slab for ALL ensemble members at once: relu(x @ W_all + b_all)
    # bf16 operands -> f32 accumulation (native MXU rate).
    feat = jnp.dot(x_ref[...], w_ref[...], preferred_element_type=jnp.float32)
    # bias + relu on the f32 accumulator (keeps the VPU path fast on v5e, which has
    # no bf16 vector ALU); only the MXU operand below is downcast.
    feat = jnp.maximum(feat + bf_ref[...], 0.0)
    # classifier over the (implicitly concatenated) representation
    out_ref[...] = (
        jnp.dot(feat.astype(jnp.bfloat16), wc_ref[...],
                preferred_element_type=jnp.float32)
        + bc_ref[...]
    ).astype(out_ref.dtype)


def _round_up(n, m):
    return ((n + m - 1) // m) * m


def kmodel_forward(x, w_stack, bf_stack, wc_split, bc, *, batch_tile=1024):
    """x: [B, D_in]; w_stack: [M, D_in, F]; bf_stack: [M, 1, F];
    wc_split: [M, F, L]; bc: [1, L]  ->  logits [B, L] (float32)."""
    B, D_in = x.shape
    M, _, F = w_stack.shape
    L = wc_split.shape[-1]
    MF = M * F

    # ---- wrapper-side fusion of the ensemble concat into the weight layout ----
    # columns m*F:(m+1)*F of W_all/b_all and rows m*F:(m+1)*F of Wc_full belong to
    # sub-model m, matching torch.cat([...], dim=1) ordering exactly.
    # Matmul operands are cast to bf16 (f32 accumulation inside the kernel); biases
    # and the output stay f32.
    w_all = jnp.transpose(w_stack, (1, 0, 2)).reshape(D_in, MF).astype(jnp.bfloat16)
    bf_all = bf_stack.reshape(1, MF).astype(jnp.float32)
    wc_full = wc_split.reshape(MF, L).astype(jnp.bfloat16)
    bc_row = bc.reshape(1, L).astype(jnp.float32)
    x_bf = x.astype(jnp.bfloat16)

    # ---- batch tile selection ----
    # B <= 128: one step (a split would only add per-step overhead at these sizes).
    # B  > 128: at least 2 "parallel" steps so v7x's two TensorCores both get work,
    #           with up to `batch_tile` (default 1024) rows/step for large batches.
    if B <= 128:
        tb = B
    else:
        tb = min(batch_tile, _round_up(pl.cdiv(B, 2), 8), _round_up(B, 8))
    grid = (pl.cdiv(B, tb),)

    cost = pl.CostEstimate(
        flops=2 * B * D_in * MF + 2 * B * MF * L,
        transcendentals=0,
        # bf16 (2 B) for x / W_all / Wc_full; f32 (4 B) for biases and output.
        bytes_accessed=2 * (B * D_in + D_in * MF + MF * L) + 4 * (MF + L + B * L),
    )

    const_map = lambda i: (0, 0)
    return pl.pallas_call(
        kmodel_kernel,
        out_shape=jax.ShapeDtypeStruct((B, L), jnp.float32),
        grid_spec=pltpu.PrefetchScalarGridSpec(
            num_scalar_prefetch=0,
            grid=grid,
            in_specs=[
                pl.BlockSpec((tb, D_in), lambda i: (i, 0)),   # x batch tile (bf16)
                # Constant-index (resident) operands: single-buffered, double-buffering
                # an unchanging block only wastes VMEM (relevant when scaled up on v7x).
                pl.BlockSpec((D_in, MF), const_map, pipeline_mode=pl.Buffered(1)),  # W_all
                pl.BlockSpec((1, MF), const_map, pipeline_mode=pl.Buffered(1)),     # b_all
                pl.BlockSpec((MF, L), const_map, pipeline_mode=pl.Buffered(1)),     # Wc_full
                pl.BlockSpec((1, L), const_map, pipeline_mode=pl.Buffered(1)),      # bc
            ],
            out_specs=pl.BlockSpec((tb, L), lambda i: (i, 0)),
        ),
        compiler_params=pltpu.CompilerParams(
            dimension_semantics=("parallel",),
        ),
        cost_estimate=cost,
    )(x_bf, w_all, bf_all, wc_full, bc_row)
    # TODO(synk): if D_in / M / F grow enough that the resident weight slabs approach
    # v7x's scoped VMEM budget, tile the contraction (extra "arbitrary" grid axis +
    # f32 accumulator scratch with pl.when init/finalize) instead of holding both
    # slabs resident.


def kmodel_reference(x, w_stack, bf_stack, wc_split, bc):
    # plain-JAX f32 reference mirroring the PyTorch forward:
    # rep = cat([model(x) for model in models], dim=1); logits = classifier(rep)
    feats = [
        jnp.maximum(x @ w_stack[m] + bf_stack[m, 0], 0.0)
        for m in range(w_stack.shape[0])
    ]
    rep = jnp.concatenate(feats, axis=1)
    wc_full = jnp.concatenate([wc_split[m] for m in range(wc_split.shape[0])], axis=0)
    return rep @ wc_full + bc[0]


if __name__ == "__main__":
    # small shapes consistent with the module: M sub-models, a shared input,
    # concatenated features fed to one classifier head.
    B, D_in, F, M, L = 8, 128, 128, 3, 128

    key = jax.random.PRNGKey(0)
    kx, kw, kbf, kwc, kbc = jax.random.split(key, 5)

    x = jax.random.normal(kx, (B, D_in), dtype=jnp.float32)
    w_stack = jax.random.normal(kw, (M, D_in, F), dtype=jnp.float32) * 0.05
    bf_stack = jax.random.normal(kbf, (M, 1, F), dtype=jnp.float32) * 0.05
    wc_split = jax.random.normal(kwc, (M, F, L), dtype=jnp.float32) * 0.05
    bc = jax.random.normal(kbc, (1, L), dtype=jnp.float32) * 0.05

    out = kmodel_forward(x, w_stack, bf_stack, wc_split, bc)
    out = jax.block_until_ready(out)
    assert out.shape == (B, L)

    # bf16 MXU operands -> compare against the f32 reference with a relaxed tolerance.
    ref = kmodel_reference(x, w_stack, bf_stack, wc_split, bc)
    assert jnp.allclose(out, ref, atol=5e-2, rtol=5e-2), "mismatch vs f32 reference"

    # tighter check against a reference using the same bf16 operand casts
    ref_bf = kmodel_reference(
        x.astype(jnp.bfloat16).astype(jnp.float32),
        w_stack.astype(jnp.bfloat16).astype(jnp.float32),
        bf_stack,
        wc_split.astype(jnp.bfloat16).astype(jnp.float32),
        bc,
    )
    assert jnp.allclose(out, ref_bf, atol=1e-2, rtol=1e-2), "mismatch vs bf16-matched reference"

    print("KERNEL_OK")
</pallas_src>

<mosaic_0001>
module attributes {stable_mosaic.version = 11 : i64} {
  func.func @kmodel_kernel(%arg0: i32, %arg1: memref<8x128xbf16, #tpu.memory_space<vmem>>, %arg2: memref<128x384xbf16, #tpu.memory_space<vmem>>, %arg3: memref<1x384xf32, #tpu.memory_space<vmem>>, %arg4: memref<384x128xbf16, #tpu.memory_space<vmem>>, %arg5: memref<1x128xf32, #tpu.memory_space<vmem>>, %arg6: memref<8x128xf32, #tpu.memory_space<vmem>>) attributes {dimension_semantics = [#tpu.dimension_semantics<parallel>], iteration_bounds = array<i64: 1>, scalar_prefetch = 0 : i64, scratch_operands = 0 : i64, tpu.core_type = #tpu.core_type<tc>, window_params = [{transform_indices = @transform_0, window_bounds = array<i64: 8, 128>}, {pipeline_mode = #tpu.pipeline_mode<synchronous>, transform_indices = @transform_1, window_bounds = array<i64: 128, 384>}, {pipeline_mode = #tpu.pipeline_mode<synchronous>, transform_indices = @transform_2, window_bounds = array<i64: 1, 384>}, {pipeline_mode = #tpu.pipeline_mode<synchronous>, transform_indices = @transform_3, window_bounds = array<i64: 384, 128>}, {pipeline_mode = #tpu.pipeline_mode<synchronous>, transform_indices = @transform_4, window_bounds = array<i64: 1, 128>}, {transform_indices = @transform_5, window_bounds = array<i64: 8, 128>}]} {
    %c0 = arith.constant 0 : index
    %c0_0 = arith.constant 0 : index
    %0 = vector.load %arg1[%c0, %c0_0] : memref<8x128xbf16, #tpu.memory_space<vmem>>, vector<8x128xbf16>
    %c0_1 = arith.constant 0 : index
    %c0_2 = arith.constant 0 : index
    %1 = vector.load %arg2[%c0_1, %c0_2] : memref<128x384xbf16, #tpu.memory_space<vmem>>, vector<128x384xbf16>
    %cst = arith.constant dense<0.000000e+00> : vector<8x384xf32>
    %2 = tpu.matmul %0, %1, %cst {dimension_numbers = #tpu.dot_dimension_numbers<[1], [0], [0], [1], [0, 0, 1, 1], [], []>} : vector<8x128xbf16>, vector<128x384xbf16>, vector<8x384xf32> -> vector<8x384xf32>
    %c0_3 = arith.constant 0 : index
    %c0_4 = arith.constant 0 : index
    %3 = vector.load %arg3[%c0_3, %c0_4] : memref<1x384xf32, #tpu.memory_space<vmem>>, vector<1x384xf32>
    %4 = vector.broadcast %3 : vector<1x384xf32> to vector<8x384xf32>
    %5 = arith.addf %2, %4 : vector<8x384xf32>
    %cst_5 = arith.constant 0.000000e+00 : f32
    %6 = vector.broadcast %cst_5 : f32 to vector<8x384xf32>
    %7 = arith.maximumf %5, %6 : vector<8x384xf32>
    %8 = arith.truncf %7 : vector<8x384xf32> to vector<8x384xbf16>
    %c0_6 = arith.constant 0 : index
    %c0_7 = arith.constant 0 : index
    %9 = vector.load %arg4[%c0_6, %c0_7] : memref<384x128xbf16, #tpu.memory_space<vmem>>, vector<384x128xbf16>
    %cst_8 = arith.constant dense<0.000000e+00> : vector<8x128xf32>
    %10 = tpu.matmul %8, %9, %cst_8 {dimension_numbers = #tpu.dot_dimension_numbers<[1], [0], [0], [1], [0, 0, 1, 1], [], []>} : vector<8x384xbf16>, vector<384x128xbf16>, vector<8x128xf32> -> vector<8x128xf32>
    %c0_9 = arith.constant 0 : index
    %c0_10 = arith.constant 0 : index
    %11 = vector.load %arg5[%c0_9, %c0_10] : memref<1x128xf32, #tpu.memory_space<vmem>>, vector<1x128xf32>
    %12 = vector.broadcast %11 : vector<1x128xf32> to vector<8x128xf32>
    %13 = arith.addf %10, %12 : vector<8x128xf32>
    %c0_11 = arith.constant 0 : index
    %c0_12 = arith.constant 0 : index
    %14 = vector.load %arg6[%c0_11, %c0_12] : memref<8x128xf32, #tpu.memory_space<vmem>>, vector<8x128xf32>
    tpu.vector_store %arg6[%c0_11, %c0_12], %13 {strides = array<i32>} : memref<8x128xf32, #tpu.memory_space<vmem>>, vector<8x128xf32>,
    return
  }
  func.func @transform_0(%arg0: i32) -> (i32, i32) {
    %c0_i32 = arith.constant 0 : i32
    %c0_i32_0 = arith.constant 0 : i32
    return %arg0, %c0_i32 : i32, i32
  }
  func.func @transform_1(%arg0: i32) -> (i32, i32) {
    %c0_i32 = arith.constant 0 : i32
    %c0_i32_0 = arith.constant 0 : i32
    %c0_i32_1 = arith.constant 0 : i32
    return %c0_i32, %c0_i32_0 : i32, i32
  }
  func.func @transform_2(%arg0: i32) -> (i32, i32) {
    %c0_i32 = arith.constant 0 : i32
    %c0_i32_0 = arith.constant 0 : i32
    %c0_i32_1 = arith.constant 0 : i32
    return %c0_i32, %c0_i32_0 : i32, i32
  }
  func.func @transform_3(%arg0: i32) -> (i32, i32) {
    %c0_i32 = arith.constant 0 : i32
    %c0_i32_0 = arith.constant 0 : i32
    %c0_i32_1 = arith.constant 0 : i32
    return %c0_i32, %c0_i32_0 : i32, i32
  }
  func.func @transform_4(%arg0: i32) -> (i32, i32) {
    %c0_i32 = arith.constant 0 : i32
    %c0_i32_0 = arith.constant 0 : i32
    %c0_i32_1 = arith.constant 0 : i32
    return %c0_i32, %c0_i32_0 : i32, i32
  }
  func.func @transform_5(%arg0: i32) -> (i32, i32) {
    %c0_i32 = arith.constant 0 : i32
    %c0_i32_0 = arith.constant 0 : i32
    return %arg0, %c0_i32 : i32, i32
  }
}

</mosaic_0001>

<bundles_post_ra>
// kernel: tpu_custom_call.1
= control target key start
LH: loop header
LB: loop body
LE: loop exit
PB: predicated region body
PF: predicated region fallthrough
CT: control target
= control target key end

     0   :  { %10 = vsyncpa [#allocation3], 0  ;;  %s1027_s0 = inlined_call_operand.hbm [shape: bf16[8,128], index: 0, kind: input, shape index: {}]   ;;  %s1028_s1 = inlined_call_operand.hbm [shape: bf16[128,384], index: 1, kind: input, shape index: {}]   ;;  %s1029_s2 = inlined_call_operand.vmem [shape: f32[1,384], index: 2, kind: input, shape index: {}]   ;;  %s1030_s3 = inlined_call_operand.hbm [shape: bf16[384,128], index: 3, kind: input, shape index: {}]   ;;  %s1031_s4 = inlined_call_operand.vmem [shape: f32[1,128], index: 4, kind: input, shape index: {}]   ;;  %s1032_s5 = inlined_call_operand.hbm [shape: f32[8,128], index: 5, kind: output, shape index: {}]  }
   0x1   :  { %11 = vsyncpa [#allocation6], 0 }
   0x2   :  { %12 = vsyncpa [#allocation4], 0  ;;  %s912_s18 = smov [#allocation5]   ;;  %s818_s22 = scalar_lea.hbm %s1028_s1, 3072 }
   0x3   :  { %s28_s19 = sshll.u32 %s912_s18, 4  ;;  %p819_p0 = scmp.ne.s32.totalorder %s1028_s1, %s818_s22  ;;  %s29_s19 = int_to_ptr.vmem [resolvable:$true] %s28_s19 }
   0x4   :  { %p822_p1 = scmp.lt.u32.totalorder %s818_s22, %s1028_s1 }
   0x6   :  { %p824_p2 = pnand %p822_p1, %p819_p0 }
   0x8   :  { %827 = shalt.err (!%p824_p2)
}
   0x9   :  { %s828_s27 = scalar_lea.vmem %s29_s19, 3072  ;;  %p833_p4 = scmp.lt.s32.totalorder %s29_s19, %s29_s19 }
   0xa   :  { %p829_p3 = scmp.ne.s32.totalorder %s29_s19, %s828_s27  ;;  %p834_p5 = scmp.lt.s32.totalorder %s828_s27, %s828_s27 }
   0xc   :  { %p835_p6 = por %p834_p5, %p833_p4 }
   0xe   :  { %p836_p7 = pnand %p835_p6, %p829_p3 }
  0x10   :  { %839 = shalt.err (!%p836_p7)
}
  0x11   :  { %s913_s28 = smov 192   ;;  %s914_s29 = smov 12  }
  0x12   :  { %34 = dma.hbm_to_vmem [thread:$0]  %s1028_s1, 3072, %s29_s19, [#allocation6], %s913_s28, %s913_s28, %s914_s29  }
  0x13   :  { %s915_s7 = smov [#allocation2]   ;;  %s916_s9 = smov [#allocation7]  }
  0x14   :  { %s19_s8 = sshll.u32 %s915_s7, 4  ;;  %s42_s10 = sshll.u32 %s916_s9, 4  ;;  %s20_s8 = int_to_ptr.vmem [resolvable:$true] %s19_s8  ;;  %s43_s10 = int_to_ptr.vmem [resolvable:$true] %s42_s10 }
  0x15   :  { %s840_s13 = scalar_lea.hbm %s1027_s0, 64 }
  0x16   :  { %p841_p8 = scmp.ne.s32.totalorder %s1027_s0, %s840_s13  ;;  %p844_p9 = scmp.lt.u32.totalorder %s840_s13, %s1027_s0 }
  0x18   :  { %p846_p10 = pnand %p844_p9, %p841_p8 }
  0x1a   :  { %849 = shalt.err (!%p846_p10)
}
  0x1b   :  { %s850_s1 = scalar_lea.vmem %s20_s8, 64  ;;  %p855_p12 = scmp.lt.s32.totalorder %s20_s8, %s20_s8 }
  0x1c   :  { %p851_p11 = scmp.ne.s32.totalorder %s20_s8, %s850_s1  ;;  %p856_p13 = scmp.lt.s32.totalorder %s850_s1, %s850_s1 }
  0x1e   :  { %p857_p0 = por %p856_p13, %p855_p12 }
  0x20   :  { %p858_p1 = pnand %p857_p0, %p851_p11 }
  0x22   :  { %861 = shalt.err (!%p858_p1)
}
  0x23   :  { %22 = dma.hbm_to_vmem [thread:$0]  %s1027_s0, 64, %s20_s8, [#allocation3]  }
  0x24   :  { %s862_s22 = scalar_lea.hbm %s1030_s3, 3072 }
  0x25   :  { %p863_p2 = scmp.ne.s32.totalorder %s1030_s3, %s862_s22  ;;  %p866_p3 = scmp.lt.u32.totalorder %s862_s22, %s1030_s3 }
  0x27   :  { %p868_p4 = pnand %p866_p3, %p863_p2 }
  0x29   :  { %871 = shalt.err (!%p868_p4)
}
  0x2a   :  { %s872_s27 = scalar_lea.vmem %s43_s10, 3072  ;;  %p877_p6 = scmp.lt.s32.totalorder %s43_s10, %s43_s10 }
  0x2b   :  { %p873_p5 = scmp.ne.s32.totalorder %s43_s10, %s872_s27  ;;  %p878_p7 = scmp.lt.s32.totalorder %s872_s27, %s872_s27 }
  0x2d   :  { %p879_p8 = por %p878_p7, %p877_p6 }
  0x2f   :  { %p880_p9 = pnand %p879_p8, %p873_p5 }
  0x31   :  { %883 = shalt.err (!%p880_p9)
}
  0x32   :  { %s917_s0 = smov 64   ;;  %s918_s28 = smov 4  }
  0x33   :  { %48 = dma.hbm_to_vmem [thread:$0]  %s1030_s3, 3072, %s43_s10, [#allocation6], %s917_s0, %s917_s0, %s918_s28  }
  0x34   :  { %906 = dma.done.wait [#allocation3], 64  }
  0x35   :  { %907 = vsyncadd [#allocation3], 4294967232 }
  0x36   :  { %908 = dma.done.wait [#allocation6], 6144  }
  0x37   :  { %909 = vsyncadd [#allocation6], 4294961152  ;;  %v919_v0 = vmov 0.0   ;;  %v920_v1 = vmov 0   ;;  %vm921_vm0 = vmmov 0   ;;  %v794_v25 = vld [vmem:[#allocation7 + $0x40] sm:$0xff]   ;;  %v96_v51 = vlaneseq }
  0x38   :  { %711 = vmatprep.subr.bf16.mxu1 %v919_v0  ;;  %271 = vmatprep.mubr.bf16.mxu0 %v920_v1  ;;  %v762_v2 = vld [vmem:[#allocation5 + $0x4] ss:$12 sps:$4 sm:$0xff]   ;;  %v764_v3 = vld [vmem:[#allocation5] ss:$12 sps:$4 sm:$0xff]   ;;  %v765_v4 = vld [vmem:[#allocation5 + $0x1c] ss:$12 sps:$4 sm:$0xff]  }
  0x39   :  { %727 = vmatprep.mubr.msk.bf16.mxu1 %vm921_vm0, %v919_v0  ;;  %239 = vmatprep.subr.bf16.mxu0 %v762_v2  ;;  %v767_v5 = vld [vmem:[#allocation5 + $0x18] ss:$12 sps:$4 sm:$0xff]   ;;  %v768_v6 = vld [vmem:[#allocation5 + $0x8] ss:$12 sps:$4 sm:$0xff]   ;;  %v772_v8 = vld [vmem:[#allocation5 + $0x20] ss:$12 sps:$4 sm:$0xff]  }
  0x3a   :  { %240 = vmatpush1.bf16.msra.mxu0 %v764_v3  ;;  %v769_v7 = vld [vmem:[#allocation5 + $0x34] ss:$12 sps:$4 sm:$0xff]   ;;  %712 = vmatpush3.bf16.msra.mxu1 %v768_v6  ;;  %v771_v9 = vld [vmem:[#allocation5 + $0x30] ss:$12 sps:$4 sm:$0xff]   ;;  %v773_v10 = vld [vmem:[#allocation5 + $0x4c] ss:$12 sps:$4 sm:$0xff]  }
  0x3b   :  { %241 = vmatprep.subr.bf16.mxu0 %v765_v4  ;;  %713 = vmatprep.subr.bf16.mxu1 %v919_v0  ;;  %v776_v11 = vld [vmem:[#allocation5 + $0x38] ss:$12 sps:$4 sm:$0xff]   ;;  %v775_v12 = vld [vmem:[#allocation5 + $0x48] ss:$12 sps:$4 sm:$0xff]   ;;  %v780_v14 = vld [vmem:[#allocation5 + $0x50] ss:$12 sps:$4 sm:$0xff]  }
  0x3c   :  { %v777_v13 = vld [vmem:[#allocation5 + $0x64] ss:$12 sps:$4 sm:$0xff]   ;;  %v779_v15 = vld [vmem:[#allocation5 + $0x60] ss:$12 sps:$4 sm:$0xff]   ;;  %v781_v16 = vld [vmem:[#allocation5 + $0x7c] ss:$12 sps:$4 sm:$0xff]  }
  0x3d   :  { %v784_v17 = vld [vmem:[#allocation5 + $0x68] ss:$12 sps:$4 sm:$0xff]   ;;  %v783_v18 = vld [vmem:[#allocation5 + $0x78] ss:$12 sps:$4 sm:$0xff]   ;;  %v788_v20 = vld [vmem:[#allocation5 + $0x80] ss:$12 sps:$4 sm:$0xff]  }
  0x3e   :  { %242 = vmatpush1.bf16.msra.mxu0 %v767_v5  ;;  %714 = vmatpush3.bf16.msra.mxu1 %v772_v8  ;;  %v785_v19 = vld [vmem:[#allocation5 + $0x94] ss:$12 sps:$4 sm:$0xff]   ;;  %v787_v21 = vld [vmem:[#allocation5 + $0x90] ss:$12 sps:$4 sm:$0xff]   ;;  %v789_v22 = vld [vmem:[#allocation5 + $0xac] ss:$12 sps:$4 sm:$0xff]  }
  0x3f   :  { %243 = vmatprep.subr.bf16.mxu0 %v769_v7  ;;  %715 = vmatprep.subr.bf16.mxu1 %v919_v0  ;;  %v792_v23 = vld [vmem:[#allocation5 + $0x98] ss:$12 sps:$4 sm:$0xff]   ;;  %v791_v24 = vld [vmem:[#allocation5 + $0xa8] ss:$12 sps:$4 sm:$0xff]   ;;  %v793_v26 = vld [vmem:[#allocation5 + $0xb0] ss:$12 sps:$4 sm:$0xff]  }
  0x40   :  { %v61_v27 = vld [vmem:[#allocation2] sm:$0xf]  ;;  %v795_v28 = vld [vmem:[#allocation7] sm:$0xff]   ;;  %v797_v29 = vld [vmem:[#allocation7 + $0x48] sm:$0xff]   ;;  %v97_v52 = vshrl.u32 %v96_v51, 7  ;;  %s922_s8 = smov [#allocation8]  }
  0x41   :  { %v796_v30 = vld [vmem:[#allocation7 + $0x80] sm:$0xff]   ;;  %v798_v31 = vld [vmem:[#allocation7 + $0x8] sm:$0xff]   ;;  %v800_v33 = vld [vmem:[#allocation7 + $0x50] sm:$0xff]   ;;  %s612_s9 = sshll.u32 %s922_s8, 4  ;;  %s613_s9 = int_to_ptr.vmem [resolvable:$true] %s612_s9 }
  0x42   :  { %244 = vmatpush1.bf16.msra.mxu0 %v771_v9  ;;  %716 = vmatpush3.bf16.msra.mxu1 %v776_v11  ;;  %v799_v32 = vld [vmem:[#allocation7 + $0x88] sm:$0xff]   ;;  %v801_v34 = vld [vmem:[#allocation7 + $0x10] sm:$0xff]   ;;  %v803_v35 = vld [vmem:[#allocation7 + $0x58] sm:$0xff]   ;;  %v98_v53 = vsub.s32 0, %v97_v52  ;;  %v102_v55 = vsub.s32 1, %v97_v52  ;;  %v106_v56 = vsub.s32 2, %v97_v52  ;;  %p889_p11 = scmp.lt.s32.totalorder %s613_s9, %s613_s9 }
  0x43   :  { %245 = vmatprep.subr.bf16.mxu0 %v773_v10  ;;  %717 = vmatprep.subr.bf16.mxu1 %v919_v0  ;;  %v802_v36 = vld [vmem:[#allocation7 + $0x90] sm:$0xff]   ;;  %v804_v37 = vld [vmem:[#allocation7 + $0x18] sm:$0xff]   ;;  %v806_v38 = vld [vmem:[#allocation7 + $0x60] sm:$0xff]   ;;  %s884_s10 = scalar_lea.vmem %s613_s9, 128 }
  0x44   :  { %v805_v39 = vld [vmem:[#allocation7 + $0x98] sm:$0xff]   ;;  %v807_v40 = vld [vmem:[#allocation7 + $0x20] sm:$0xff]   ;;  %v809_v41 = vld [vmem:[#allocation7 + $0x68] sm:$0xff]   ;;  %p885_p10 = scmp.ne.s32.totalorder %s613_s9, %s884_s10  ;;  %p890_p12 = scmp.lt.s32.totalorder %s884_s10, %s884_s10 }
  0x45   :  { %v808_v42 = vld [vmem:[#allocation7 + $0xa0] sm:$0xff]   ;;  %v810_v43 = vld [vmem:[#allocation7 + $0x28] sm:$0xff]   ;;  %v812_v45 = vld [vmem:[#allocation7 + $0x70] sm:$0xff]  }
  0x46   :  { %246 = vmatpush1.bf16.msra.mxu0 %v775_v12  ;;  %718 = vmatpush3.bf16.msra.mxu1 %v780_v14  ;;  %v811_v44 = vld [vmem:[#allocation7 + $0xa8] sm:$0xff]   ;;  %v813_v46 = vld [vmem:[#allocation7 + $0x30] sm:$0xff]   ;;  %v815_v48 = vld [vmem:[#allocation7 + $0x78] sm:$0xff]   ;;  %p891_p13 = por %p890_p12, %p889_p11 }
  0x47   :  { %247 = vmatprep.subr.bf16.mxu0 %v777_v13  ;;  %719 = vmatprep.subr.bf16.mxu1 %v919_v0  ;;  %v814_v47 = vld [vmem:[#allocation7 + $0xb0] sm:$0xff]   ;;  %v816_v49 = vld [vmem:[#allocation7 + $0x38] sm:$0xff]  }
  0x48   :  { %v817_v50 = vld [vmem:[#allocation7 + $0xb8] sm:$0xff]   ;;  %p892_p0 = pnand %p891_p13, %p885_p10 }
  0x49   :  { %v94_v54 = vld [vmem:[%s1029_s2] sm:$0x7] }
  0x4a   :  { %248 = vmatpush1.bf16.msra.mxu0 %v779_v15  ;;  %720 = vmatpush3.bf16.msra.mxu1 %v784_v17  ;;  %v99_v57 = vrot.slane %v94_v54, %v98_v53  ;;  %v103_v58 = vrot.slane %v94_v54, %v102_v55  ;;  %v107_v59 = vrot.slane %v94_v54, %v106_v56 }
  0x4b   :  { %249 = vmatprep.subr.bf16.mxu0 %v781_v16  ;;  %721 = vmatprep.subr.bf16.mxu1 %v919_v0  ;;  %v646_v16 = vld [vmem:[%s1031_s4] ss:$0 sm:$0xff] }
  0x4e   :  { %250 = vmatpush1.bf16.msra.mxu0 %v783_v18  ;;  %722 = vmatpush3.bf16.msra.mxu1 %v788_v20 }
  0x4f   :  { %251 = vmatprep.subr.bf16.mxu0 %v785_v19  ;;  %723 = vmatprep.subr.bf16.mxu1 %v919_v0 }
  0x52   :  { %252 = vmatpush1.bf16.msra.mxu0 %v787_v21  ;;  %724 = vmatpush3.bf16.msra.mxu1 %v792_v23 }
  0x53   :  { %253 = vmatprep.subr.bf16.mxu0 %v789_v22  ;;  %725 = vmatprep.subr.bf16.mxu1 %v919_v0 }
  0x56   :  { %254 = vmatpush1.bf16.msra.mxu0 %v791_v24  ;;  %726 = vmatpush3.bf16.msra.mxu1 %v793_v26 }
  0x57   :  { %680 = vmatprep.subr.bf16.mxu0 %v794_v25  ;;  %731 = vmatprep.subr.bf16.mxu1 %v919_v0 }
  0x59   :  { %272 = vmatmul.mubr.bf16.vlgmr.msra.gmra.mrb[0].mxu0 %v61_v27  ;;  %728 = vmatmul.mubr.bf16.vlgmr.msra.gmra.mrb[0].mxu1 %v61_v27 }
  0x5a   :  { %681 = vmatpush3.bf16.msra.mxu0 %v795_v28  ;;  %732 = vmatpush3.bf16.msra.mxu1 %v796_v30 }
  0x5b   :  { %682 = vmatprep.subr.bf16.mxu0 %v797_v29  ;;  %747 = vmatprep.mubr.msk.bf16.mxu1 %vm921_vm0, %v919_v0 }
  0x5c   :  { %733 = vmatprep.subr.bf16.mxu1 %v919_v0 }
  0x5e   :  { %683 = vmatpush3.bf16.msra.mxu0 %v798_v31  ;;  %734 = vmatpush3.bf16.msra.mxu1 %v799_v32 }
  0x5f   :  { %684 = vmatprep.subr.bf16.mxu0 %v800_v33  ;;  %735 = vmatprep.subr.bf16.mxu1 %v919_v0 }
  0x62   :  { %685 = vmatpush3.bf16.msra.mxu0 %v801_v34  ;;  %736 = vmatpush3.bf16.msra.mxu1 %v802_v36 }
  0x63   :  { %686 = vmatprep.subr.bf16.mxu0 %v803_v35  ;;  %737 = vmatprep.subr.bf16.mxu1 %v919_v0 }
  0x66   :  { %687 = vmatpush3.bf16.msra.mxu0 %v804_v37  ;;  %738 = vmatpush3.bf16.msra.mxu1 %v805_v39 }
  0x67   :  { %688 = vmatprep.subr.bf16.mxu0 %v806_v38  ;;  %739 = vmatprep.subr.bf16.mxu1 %v919_v0 }
  0x6a   :  { %689 = vmatpush3.bf16.msra.mxu0 %v807_v40  ;;  %740 = vmatpush3.bf16.msra.mxu1 %v808_v42 }
  0x6b   :  { %690 = vmatprep.subr.bf16.mxu0 %v809_v41  ;;  %741 = vmatprep.subr.bf16.mxu1 %v919_v0 }
  0x6e   :  { %691 = vmatpush3.bf16.msra.mxu0 %v810_v43  ;;  %742 = vmatpush3.bf16.msra.mxu1 %v811_v44 }
  0x6f   :  { %692 = vmatprep.subr.bf16.mxu0 %v812_v45  ;;  %743 = vmatprep.subr.bf16.mxu1 %v919_v0 }
  0x72   :  { %693 = vmatpush3.bf16.msra.mxu0 %v813_v46  ;;  %744 = vmatpush3.bf16.msra.mxu1 %v814_v47 }
  0x73   :  { %694 = vmatprep.subr.bf16.mxu0 %v815_v48  ;;  %745 = vmatprep.subr.bf16.mxu1 %v919_v0 }
  0x76   :  { %695 = vmatpush3.bf16.msra.mxu0 %v816_v49  ;;  %746 = vmatpush3.bf16.msra.mxu1 %v817_v50 }
 0x12c   :  { %v273_v60 = vpop.f32.mrb[0].mxu0  ;;  %v314_v1 = vpop.f32.mrb[0].mxu1 }
 0x12d   :  { %v274_v61 = vadd.f32 %v273_v60, %v99_v57  ;;  %v275_v62 = vpop.f32.mrb[1].mxu0  ;;  %v315_v4 = vadd.f32 %v314_v1, %v107_v59  ;;  %v729_v5 = vpop.f32.mrb[1].mxu1 }
 0x12e   :  { %v276_v63 = vadd.f32 %v275_v62, %v103_v58  ;;  %v277_v0 = vpop.f32.mrb[2].mxu0  ;;  %v317_v7 = vpop.f32.mrb[2].mxu1 }
 0x12f   :  { %v320_v2 = vmax.f32 %v274_v61, 0.0  ;;  %v278_v3 = vpop.f32.mrb[3].mxu0  ;;  %v322_v8 = vmax.f32 %v315_v4, 0.0  ;;  %v730_v9 = vpop.f32.mrb[3].mxu1 }
 0x130   :  { %v321_v6 = vmax.f32 %v276_v63, 0.0 }
 0x131   :  { %v323_v11 = vpack.c.bf16 %v320_v2, %v320_v2  ;;  %v325_v12 = vpack.c.bf16 %v322_v8, %v322_v8 }
 0x132   :  { %v324_v10 = vpack.c.bf16 %v321_v6, %v321_v6 }
 0x133   :  { %748 = vmatmul.mubr.bf16.vlgmr.msra.gmra.mrb[4].mxu1 %v325_v12 }
 0x134   :  { %557 = vmatprep.mubr.bf16.mxu0 %v324_v10 }
 0x135   :  { %558 = vmatmul.mubr.bf16.vlgmr.msra.gmra.mrb[4].mxu0 %v323_v11 }
 0x206   :  { %v599_v14 = vpop.f32.mrb[4].mxu1 }
 0x207   :  { %v749_v17 = vpop.f32.mrb[5].mxu1 }
 0x208   :  { %v696_v13 = vpop.f32.mrb[4].mxu0  ;;  %v602_v20 = vpop.f32.mrb[6].mxu1 }
 0x209   :  { %v697_v15 = vpop.f32.mrb[5].mxu0  ;;  %v750_v22 = vpop.f32.mrb[7].mxu1 }
 0x20a   :  { %v698_v18 = vadd.f32 %v697_v15, %v696_v13  ;;  %v699_v19 = vpop.f32.mrb[6].mxu0 }
 0x20b   :  { %v700_v21 = vpop.f32.mrb[7].mxu0 }
 0x20c   :  { %v560_v23 = vadd.f32 %v698_v18, %v646_v16 }
 0x20e   :  { %v600_v24 = vadd.f32 %v599_v14, %v560_v23 }
 0x210   :  { %605 = vst [vmem:[#allocation8] sm:$0xff] %v600_v24 }
 0x211   :  { %895 = shalt.err (!%p892_p0)
}
 0x212   :  { %s896_s12 = scalar_lea.hbm %s1032_s5, 128 }
 0x213   :  { %p897_p1 = scmp.ne.s32.totalorder %s1032_s5, %s896_s12  ;;  %p900_p2 = scmp.lt.u32.totalorder %s896_s12, %s1032_s5 }
 0x215   :  { %p902_p3 = pnand %p900_p2, %p897_p1 }
 0x217   :  { %905 = shalt.err (!%p902_p3)
}
 0x218   :  { %615 = dma.vmem_to_hbm [thread:$0]  %s613_s9, 128, %s1032_s5, [#allocation4]  }
 0x219   :  { %910 = dma.done.wait [#allocation4], 128  }
 0x21a   :  { %911 = vsyncadd [#allocation4], 4294967168 }
 0x21b   :  { %619 = vsyncpa [#allocation3], 1 }
 0x21c   :  { %620 = vsyncpa [#allocation6], 1 }
 0x21d   :  { %621 = vsyncpa [#allocation4], 1 }

</bundles_post_ra>
